<compile_context>
chip_gen: v6e
topology: v6e:2x2x1
jax: 0.10.0
libtpu: 0.0.40
codegen_flags: <defaults>
</compile_context>

<pallas_src>
import functools

import jax
import jax.numpy as jnp
from jax import lax
from jax.experimental import pallas as pl
from jax.experimental.pallas import tpu as pltpu

EPS = 1e-5
_INV_SQRT2 = 0.7071067811865476


def _round_up(x, m):
    return (x + m - 1) // m * m


def _layernorm_1pass(h, gamma, beta):
    # LayerNorm over last dim, population variance, eps=1e-5, elementwise affine.
    # Single reduction pass: s1 = sum(h), s2 = sum(h*h).
    n = h.shape[-1]
    s1 = jnp.sum(h, axis=-1, keepdims=True)
    s2 = jnp.sum(h * h, axis=-1, keepdims=True)
    mean = s1 * (1.0 / n)
    var = jnp.maximum(s2 * (1.0 / n) - mean * mean, 0.0)
    inv = lax.rsqrt(var + EPS)              # EUP
    return (h - mean) * inv * gamma + beta


def _gelu_exact(h):
    # PyTorch nn.GELU() default = exact erf-based GELU (kept for numerical parity).
    return 0.5 * h * (1.0 + lax.erf(h * _INV_SQRT2))


def residual_block_kernel(x_ref, w1_ref, b1_ref, g1_ref, be1_ref,
                          w2_ref, b2_ref, g2_ref, be2_ref, o_ref,
                          *, mm_dtype):
    x = x_ref[...].astype(jnp.float32)

    # Linear(input_dim -> hidden_dim): low-precision operands into the MXU, f32 accum.
    h = jnp.dot(x.astype(mm_dtype), w1_ref[...],
                preferred_element_type=jnp.float32) + b1_ref[...]

    # LayerNorm(hidden_dim) + exact GELU, f32 elementwise math.
    h = _layernorm_1pass(h, g1_ref[...], be1_ref[...])
    h = _gelu_exact(h)

    # Dropout is identity in eval mode.
    # TODO(synk): training-mode dropout (stochastic mask via pltpu.prng_random_bits) not emitted.

    # Linear(hidden_dim -> input_dim)
    y = jnp.dot(h.astype(mm_dtype), w2_ref[...],
                preferred_element_type=jnp.float32) + b2_ref[...]

    # LayerNorm(input_dim) + residual add.
    y = _layernorm_1pass(y, g2_ref[...], be2_ref[...])
    o_ref[...] = (x + y).astype(o_ref.dtype)


def residual_block(x, params, *, block_b=128, mm_dtype=jnp.bfloat16):
    """x: (B, D) float32. params: dict of weights in math orientation."""
    B, D = x.shape
    H = params["w1"].shape[1]

    # Batch tile: multiple of 8 (sublanes), no bigger than the (padded) batch.
    tb = min(int(block_b), _round_up(B, 8))
    tb = _round_up(tb, 8)
    b_pad = _round_up(B, tb)
    x_in = jnp.pad(x, ((0, b_pad - B), (0, 0))) if b_pad != B else x
    grid = (b_pad // tb,)

    # Weights in MXU dtype (halves HBM/VMEM weight traffic); small vectors stay f32.
    w1 = params["w1"].astype(mm_dtype)
    w2 = params["w2"].astype(mm_dtype)
    b1 = params["b1"].reshape(1, H).astype(jnp.float32)
    g1 = params["gamma1"].reshape(1, H).astype(jnp.float32)
    be1 = params["beta1"].reshape(1, H).astype(jnp.float32)
    b2 = params["b2"].reshape(1, D).astype(jnp.float32)
    g2 = params["gamma2"].reshape(1, D).astype(jnp.float32)
    be2 = params["beta2"].reshape(1, D).astype(jnp.float32)

    stream = lambda i: (i, 0)     # x / out: walk the batch axis
    resident = lambda i: (0, 0)   # weights / params: same block every step -> stay in VMEM

    # Rough VMEM budget (double-buffered blocks + intermediate headroom), clamped to
    # stay under v7x's 64 MiB physical VMEM.
    mm_bytes = jnp.dtype(mm_dtype).itemsize
    vmem_need = (
        2 * 2 * tb * D * 4                 # x + out blocks, double-buffered, f32
        + 2 * 2 * D * H * mm_bytes         # w1 + w2, double-buffered
        + 2 * 3 * (H + D) * 4              # bias / LN rows, double-buffered
        + 4 * tb * H * 4                   # intermediates (h, GELU, etc.)
    )
    vmem_limit = int(min(max(2 * vmem_need, 16 * 1024 * 1024), 64 * 1024 * 1024))

    # Advisory cost hint for XLA's scheduler around the custom call.
    cost = pl.CostEstimate(
        flops=4 * b_pad * D * H,                       # two (B,D)x(D,H)-class matmuls
        transcendentals=b_pad * (H + 2),               # erf + two rsqrt per row
        bytes_accessed=(2 * b_pad * D * 4              # x in + out
                        + 2 * D * H * mm_bytes         # w1 + w2
                        + 3 * (H + D) * 4),            # biases / LN params
    )

    out = pl.pallas_call(
        functools.partial(residual_block_kernel, mm_dtype=mm_dtype),
        out_shape=jax.ShapeDtypeStruct((b_pad, D), x.dtype),
        grid=grid,
        in_specs=[
            pl.BlockSpec((tb, D), stream),     # x
            pl.BlockSpec((D, H), resident),    # w1
            pl.BlockSpec((1, H), resident),    # b1
            pl.BlockSpec((1, H), resident),    # gamma1
            pl.BlockSpec((1, H), resident),    # beta1
            pl.BlockSpec((H, D), resident),    # w2
            pl.BlockSpec((1, D), resident),    # b2
            pl.BlockSpec((1, D), resident),    # gamma2
            pl.BlockSpec((1, D), resident),    # beta2
        ],
        out_specs=pl.BlockSpec((tb, D), stream),
        compiler_params=pltpu.CompilerParams(
            dimension_semantics=("parallel",),
            vmem_limit_bytes=vmem_limit,
        ),
        cost_estimate=cost,
    )(x_in, w1, b1, g1, be1, w2, b2, g2, be2)

    return out[:B] if b_pad != B else out


def init_params(key, input_dim, hidden_dim):
    k1, k2, k3, k4 = jax.random.split(key, 4)
    s1 = 1.0 / jnp.sqrt(input_dim)
    s2 = 1.0 / jnp.sqrt(hidden_dim)
    return {
        "w1": jax.random.uniform(k1, (input_dim, hidden_dim), jnp.float32, -s1, s1),
        "b1": jax.random.uniform(k2, (hidden_dim,), jnp.float32, -s1, s1),
        "gamma1": jnp.ones((hidden_dim,), jnp.float32),
        "beta1": jnp.zeros((hidden_dim,), jnp.float32),
        "w2": jax.random.uniform(k3, (hidden_dim, input_dim), jnp.float32, -s2, s2),
        "b2": jax.random.uniform(k4, (input_dim,), jnp.float32, -s2, s2),
        "gamma2": jnp.ones((input_dim,), jnp.float32),
        "beta2": jnp.zeros((input_dim,), jnp.float32),
    }


def residual_block_ref(x, p, mm_dtype=None):
    """Pure-JAX reference. mm_dtype=None -> exact f32 PyTorch semantics;
    mm_dtype=bf16 -> matches the kernel's matmul dtype policy."""
    cast = (lambda a: a.astype(mm_dtype)) if mm_dtype is not None else (lambda a: a)

    def ln(v, g, b):
        mu = v.mean(-1, keepdims=True)
        var = ((v - mu) ** 2).mean(-1, keepdims=True)
        return (v - mu) * lax.rsqrt(var + EPS) * g + b

    h = jnp.dot(cast(x), cast(p["w1"]), preferred_element_type=jnp.float32) + p["b1"]
    h = ln(h, p["gamma1"], p["beta1"])
    h = 0.5 * h * (1.0 + lax.erf(h * _INV_SQRT2))
    y = jnp.dot(cast(h), cast(p["w2"]), preferred_element_type=jnp.float32) + p["b2"]
    y = ln(y, p["gamma2"], p["beta2"])
    return x + y


if __name__ == "__main__":
    key = jax.random.PRNGKey(0)
    kx, kp = jax.random.split(key)

    # Lane-dense small shapes: feature dims multiples of 128, batch multiple of 8.
    batch, input_dim, hidden_dim = 64, 128, 256
    x = jax.random.normal(kx, (batch, input_dim), jnp.float32)
    params = init_params(kp, input_dim, hidden_dim)

    out = residual_block(x, params, block_b=32, mm_dtype=jnp.bfloat16)
    out = jax.block_until_ready(out)
    assert out.shape == (batch, input_dim)

    # Tight check against a reference with the same bf16-matmul / f32-accum policy.
    ref_mm = residual_block_ref(x, params, mm_dtype=jnp.bfloat16)
    err_mm = jnp.max(jnp.abs(out - ref_mm))
    assert jnp.allclose(out, ref_mm, atol=2e-3, rtol=2e-3), f"max abs err vs bf16 ref {err_mm}"

    # Loose check against the exact f32 PyTorch-semantics reference (bf16-bounded error).
    ref_f32 = residual_block_ref(x, params)
    err_f32 = jnp.max(jnp.abs(out - ref_f32))
    assert jnp.allclose(out, ref_f32, atol=5e-2, rtol=5e-2), f"max abs err vs f32 ref {err_f32}"

    print("KERNEL_OK")
</pallas_src>

<mosaic_0001>
module attributes {stable_mosaic.version = 11 : i64} {
  func.func @residual_block_kernel(%arg0: i32, %arg1: memref<32x128xf32, #tpu.memory_space<vmem>>, %arg2: memref<128x256xbf16, #tpu.memory_space<vmem>>, %arg3: memref<1x256xf32, #tpu.memory_space<vmem>>, %arg4: memref<1x256xf32, #tpu.memory_space<vmem>>, %arg5: memref<1x256xf32, #tpu.memory_space<vmem>>, %arg6: memref<256x128xbf16, #tpu.memory_space<vmem>>, %arg7: memref<1x128xf32, #tpu.memory_space<vmem>>, %arg8: memref<1x128xf32, #tpu.memory_space<vmem>>, %arg9: memref<1x128xf32, #tpu.memory_space<vmem>>, %arg10: memref<32x128xf32, #tpu.memory_space<vmem>>) attributes {dimension_semantics = [#tpu.dimension_semantics<parallel>], iteration_bounds = array<i64: 2>, scalar_prefetch = 0 : i64, scratch_operands = 0 : i64, tpu.core_type = #tpu.core_type<tc>, window_params = [{transform_indices = @transform_0, window_bounds = array<i64: 32, 128>}, {pipeline_mode = #tpu.pipeline_mode<synchronous>, transform_indices = @transform_1, window_bounds = array<i64: 128, 256>}, {pipeline_mode = #tpu.pipeline_mode<synchronous>, transform_indices = @transform_2, window_bounds = array<i64: 1, 256>}, {pipeline_mode = #tpu.pipeline_mode<synchronous>, transform_indices = @transform_3, window_bounds = array<i64: 1, 256>}, {pipeline_mode = #tpu.pipeline_mode<synchronous>, transform_indices = @transform_4, window_bounds = array<i64: 1, 256>}, {pipeline_mode = #tpu.pipeline_mode<synchronous>, transform_indices = @transform_5, window_bounds = array<i64: 256, 128>}, {pipeline_mode = #tpu.pipeline_mode<synchronous>, transform_indices = @transform_6, window_bounds = array<i64: 1, 128>}, {pipeline_mode = #tpu.pipeline_mode<synchronous>, transform_indices = @transform_7, window_bounds = array<i64: 1, 128>}, {pipeline_mode = #tpu.pipeline_mode<synchronous>, transform_indices = @transform_8, window_bounds = array<i64: 1, 128>}, {transform_indices = @transform_9, window_bounds = array<i64: 32, 128>}]} {
    %c0 = arith.constant 0 : index
    %c0_0 = arith.constant 0 : index
    %0 = vector.load %arg1[%c0, %c0_0] : memref<32x128xf32, #tpu.memory_space<vmem>>, vector<32x128xf32>
    %1 = arith.truncf %0 : vector<32x128xf32> to vector<32x128xbf16>
    %c0_1 = arith.constant 0 : index
    %c0_2 = arith.constant 0 : index
    %2 = vector.load %arg2[%c0_1, %c0_2] : memref<128x256xbf16, #tpu.memory_space<vmem>>, vector<128x256xbf16>
    %cst = arith.constant dense<0.000000e+00> : vector<32x256xf32>
    %3 = tpu.matmul %1, %2, %cst {dimension_numbers = #tpu.dot_dimension_numbers<[1], [0], [0], [1], [0, 0, 1, 1], [], []>} : vector<32x128xbf16>, vector<128x256xbf16>, vector<32x256xf32> -> vector<32x256xf32>
    %c0_3 = arith.constant 0 : index
    %c0_4 = arith.constant 0 : index
    %4 = vector.load %arg3[%c0_3, %c0_4] : memref<1x256xf32, #tpu.memory_space<vmem>>, vector<1x256xf32>
    %5 = vector.broadcast %4 : vector<1x256xf32> to vector<32x256xf32>
    %6 = arith.addf %3, %5 : vector<32x256xf32>
    %c0_5 = arith.constant 0 : index
    %c0_6 = arith.constant 0 : index
    %7 = vector.load %arg4[%c0_5, %c0_6] : memref<1x256xf32, #tpu.memory_space<vmem>>, vector<1x256xf32>
    %c0_7 = arith.constant 0 : index
    %c0_8 = arith.constant 0 : index
    %8 = vector.load %arg5[%c0_7, %c0_8] : memref<1x256xf32, #tpu.memory_space<vmem>>, vector<1x256xf32>
    %cst_9 = arith.constant dense<0.000000e+00> : vector<32xf32>
    %9 = vector.multi_reduction <add>, %6, %cst_9 [1] : vector<32x256xf32> to vector<32xf32>
    %10 = vector.shape_cast %9 : vector<32xf32> to vector<32x1xf32>
    %11 = arith.mulf %6, %6 : vector<32x256xf32>
    %cst_10 = arith.constant dense<0.000000e+00> : vector<32xf32>
    %12 = vector.multi_reduction <add>, %11, %cst_10 [1] : vector<32x256xf32> to vector<32xf32>
    %13 = vector.shape_cast %12 : vector<32xf32> to vector<32x1xf32>
    %cst_11 = arith.constant 3.906250e-03 : f32
    %14 = vector.broadcast %cst_11 : f32 to vector<32x1xf32>
    %15 = arith.mulf %10, %14 : vector<32x1xf32>
    %cst_12 = arith.constant 3.906250e-03 : f32
    %16 = vector.broadcast %cst_12 : f32 to vector<32x1xf32>
    %17 = arith.mulf %13, %16 : vector<32x1xf32>
    %18 = arith.mulf %15, %15 : vector<32x1xf32>
    %19 = arith.subf %17, %18 : vector<32x1xf32>
    %cst_13 = arith.constant 0.000000e+00 : f32
    %20 = vector.broadcast %cst_13 : f32 to vector<32x1xf32>
    %21 = arith.maximumf %19, %20 : vector<32x1xf32>
    %cst_14 = arith.constant 9.99999974E-6 : f32
    %22 = vector.broadcast %cst_14 : f32 to vector<32x1xf32>
    %23 = arith.addf %21, %22 : vector<32x1xf32>
    %24 = math.rsqrt %23 : vector<32x1xf32>
    %25 = vector.broadcast %15 : vector<32x1xf32> to vector<32x256xf32>
    %26 = arith.subf %6, %25 : vector<32x256xf32>
    %27 = vector.broadcast %24 : vector<32x1xf32> to vector<32x256xf32>
    %28 = arith.mulf %26, %27 : vector<32x256xf32>
    %29 = vector.broadcast %7 : vector<1x256xf32> to vector<32x256xf32>
    %30 = arith.mulf %28, %29 : vector<32x256xf32>
    %31 = vector.broadcast %8 : vector<1x256xf32> to vector<32x256xf32>
    %32 = arith.addf %30, %31 : vector<32x256xf32>
    %cst_15 = arith.constant 5.000000e-01 : f32
    %33 = vector.broadcast %cst_15 : f32 to vector<32x256xf32>
    %34 = arith.mulf %33, %32 : vector<32x256xf32>
    %cst_16 = arith.constant 0.707106769 : f32
    %35 = vector.broadcast %cst_16 : f32 to vector<32x256xf32>
    %36 = arith.mulf %32, %35 : vector<32x256xf32>
    %37 = math.erf %36 : vector<32x256xf32>
    %cst_17 = arith.constant 1.000000e+00 : f32
    %38 = vector.broadcast %cst_17 : f32 to vector<32x256xf32>
    %39 = arith.addf %38, %37 : vector<32x256xf32>
    %40 = arith.mulf %34, %39 : vector<32x256xf32>
    %41 = arith.truncf %40 : vector<32x256xf32> to vector<32x256xbf16>
    %c0_18 = arith.constant 0 : index
    %c0_19 = arith.constant 0 : index
    %42 = vector.load %arg6[%c0_18, %c0_19] : memref<256x128xbf16, #tpu.memory_space<vmem>>, vector<256x128xbf16>
    %cst_20 = arith.constant dense<0.000000e+00> : vector<32x128xf32>
    %43 = tpu.matmul %41, %42, %cst_20 {dimension_numbers = #tpu.dot_dimension_numbers<[1], [0], [0], [1], [0, 0, 1, 1], [], []>} : vector<32x256xbf16>, vector<256x128xbf16>, vector<32x128xf32> -> vector<32x128xf32>
    %c0_21 = arith.constant 0 : index
    %c0_22 = arith.constant 0 : index
    %44 = vector.load %arg7[%c0_21, %c0_22] : memref<1x128xf32, #tpu.memory_space<vmem>>, vector<1x128xf32>
    %45 = vector.broadcast %44 : vector<1x128xf32> to vector<32x128xf32>
    %46 = arith.addf %43, %45 : vector<32x128xf32>
    %c0_23 = arith.constant 0 : index
    %c0_24 = arith.constant 0 : index
    %47 = vector.load %arg8[%c0_23, %c0_24] : memref<1x128xf32, #tpu.memory_space<vmem>>, vector<1x128xf32>
    %c0_25 = arith.constant 0 : index
    %c0_26 = arith.constant 0 : index
    %48 = vector.load %arg9[%c0_25, %c0_26] : memref<1x128xf32, #tpu.memory_space<vmem>>, vector<1x128xf32>
    %cst_27 = arith.constant dense<0.000000e+00> : vector<32xf32>
    %49 = vector.multi_reduction <add>, %46, %cst_27 [1] : vector<32x128xf32> to vector<32xf32>
    %50 = vector.shape_cast %49 : vector<32xf32> to vector<32x1xf32>
    %51 = arith.mulf %46, %46 : vector<32x128xf32>
    %cst_28 = arith.constant dense<0.000000e+00> : vector<32xf32>
    %52 = vector.multi_reduction <add>, %51, %cst_28 [1] : vector<32x128xf32> to vector<32xf32>
    %53 = vector.shape_cast %52 : vector<32xf32> to vector<32x1xf32>
    %cst_29 = arith.constant 7.812500e-03 : f32
    %54 = vector.broadcast %cst_29 : f32 to vector<32x1xf32>
    %55 = arith.mulf %50, %54 : vector<32x1xf32>
    %cst_30 = arith.constant 7.812500e-03 : f32
    %56 = vector.broadcast %cst_30 : f32 to vector<32x1xf32>
    %57 = arith.mulf %53, %56 : vector<32x1xf32>
    %58 = arith.mulf %55, %55 : vector<32x1xf32>
    %59 = arith.subf %57, %58 : vector<32x1xf32>
    %cst_31 = arith.constant 0.000000e+00 : f32
    %60 = vector.broadcast %cst_31 : f32 to vector<32x1xf32>
    %61 = arith.maximumf %59, %60 : vector<32x1xf32>
    %cst_32 = arith.constant 9.99999974E-6 : f32
    %62 = vector.broadcast %cst_32 : f32 to vector<32x1xf32>
    %63 = arith.addf %61, %62 : vector<32x1xf32>
    %64 = math.rsqrt %63 : vector<32x1xf32>
    %65 = vector.broadcast %55 : vector<32x1xf32> to vector<32x128xf32>
    %66 = arith.subf %46, %65 : vector<32x128xf32>
    %67 = vector.broadcast %64 : vector<32x1xf32> to vector<32x128xf32>
    %68 = arith.mulf %66, %67 : vector<32x128xf32>
    %69 = vector.broadcast %47 : vector<1x128xf32> to vector<32x128xf32>
    %70 = arith.mulf %68, %69 : vector<32x128xf32>
    %71 = vector.broadcast %48 : vector<1x128xf32> to vector<32x128xf32>
    %72 = arith.addf %70, %71 : vector<32x128xf32>
    %73 = arith.addf %0, %72 : vector<32x128xf32>
    %c0_33 = arith.constant 0 : index
    %c0_34 = arith.constant 0 : index
    %74 = vector.load %arg10[%c0_33, %c0_34] : memref<32x128xf32, #tpu.memory_space<vmem>>, vector<32x128xf32>
    tpu.vector_store %arg10[%c0_33, %c0_34], %73 {strides = array<i32>} : memref<32x128xf32, #tpu.memory_space<vmem>>, vector<32x128xf32>,
    return
  }
  func.func @transform_0(%arg0: i32) -> (i32, i32) {
    %c0_i32 = arith.constant 0 : i32
    %c0_i32_0 = arith.constant 0 : i32
    return %arg0, %c0_i32 : i32, i32
  }
  func.func @transform_1(%arg0: i32) -> (i32, i32) {
    %c0_i32 = arith.constant 0 : i32
    %c0_i32_0 = arith.constant 0 : i32
    %c0_i32_1 = arith.constant 0 : i32
    return %c0_i32, %c0_i32_0 : i32, i32
  }
  func.func @transform_2(%arg0: i32) -> (i32, i32) {
    %c0_i32 = arith.constant 0 : i32
    %c0_i32_0 = arith.constant 0 : i32
    %c0_i32_1 = arith.constant 0 : i32
    return %c0_i32, %c0_i32_0 : i32, i32
  }
  func.func @transform_3(%arg0: i32) -> (i32, i32) {
    %c0_i32 = arith.constant 0 : i32
    %c0_i32_0 = arith.constant 0 : i32
    %c0_i32_1 = arith.constant 0 : i32
    return %c0_i32, %c0_i32_0 : i32, i32
  }
  func.func @transform_4(%arg0: i32) -> (i32, i32) {
    %c0_i32 = arith.constant 0 : i32
    %c0_i32_0 = arith.constant 0 : i32
    %c0_i32_1 = arith.constant 0 : i32
    return %c0_i32, %c0_i32_0 : i32, i32
  }
  func.func @transform_5(%arg0: i32) -> (i32, i32) {
    %c0_i32 = arith.constant 0 : i32
    %c0_i32_0 = arith.constant 0 : i32
    %c0_i32_1 = arith.constant 0 : i32
    return %c0_i32, %c0_i32_0 : i32, i32
  }
  func.func @transform_6(%arg0: i32) -> (i32, i32) {
    %c0_i32 = arith.constant 0 : i32
    %c0_i32_0 = arith.constant 0 : i32
    %c0_i32_1 = arith.constant 0 : i32
    return %c0_i32, %c0_i32_0 : i32, i32
  }
  func.func @transform_7(%arg0: i32) -> (i32, i32) {
    %c0_i32 = arith.constant 0 : i32
    %c0_i32_0 = arith.constant 0 : i32
    %c0_i32_1 = arith.constant 0 : i32
    return %c0_i32, %c0_i32_0 : i32, i32
  }
  func.func @transform_8(%arg0: i32) -> (i32, i32) {
    %c0_i32 = arith.constant 0 : i32
    %c0_i32_0 = arith.constant 0 : i32
    %c0_i32_1 = arith.constant 0 : i32
    return %c0_i32, %c0_i32_0 : i32, i32
  }
  func.func @transform_9(%arg0: i32) -> (i32, i32) {
    %c0_i32 = arith.constant 0 : i32
    %c0_i32_0 = arith.constant 0 : i32
    return %arg0, %c0_i32 : i32, i32
  }
}

</mosaic_0001>

<bundles_post_ra>
// kernel: tpu_custom_call.1
= control target key start
LH: loop header
LB: loop body
LE: loop exit
PB: predicated region body
PF: predicated region fallthrough
CT: control target
= control target key end

     0   :  { %s1846_s0 = inlined_call_operand.hbm [shape: f32[64,128], index: 0, kind: input, shape index: {}]   ;;  %s1847_s1 = inlined_call_operand.hbm [shape: bf16[128,256], index: 1, kind: input, shape index: {}]   ;;  %s1848_s2 = inlined_call_operand.vmem [shape: f32[1,256], index: 2, kind: input, shape index: {}]   ;;  %s1849_s3 = inlined_call_operand.vmem [shape: f32[1,256], index: 3, kind: input, shape index: {}]   ;;  %s1850_s4 = inlined_call_operand.vmem [shape: f32[1,256], index: 4, kind: input, shape index: {}]   ;;  %s1851_s5 = inlined_call_operand.hbm [shape: bf16[256,128], index: 5, kind: input, shape index: {}]   ;;  %s1852_s6 = inlined_call_operand.vmem [shape: f32[1,128], index: 6, kind: input, shape index: {}]   ;;  %s1853_s7 = inlined_call_operand.vmem [shape: f32[1,128], index: 7, kind: input, shape index: {}]   ;;  %s1854_s8 = inlined_call_operand.vmem [shape: f32[1,128], index: 8, kind: input, shape index: {}]   ;;  %s1855_s9 = inlined_call_operand.hbm [shape: f32[64,128], index: 9, kind: output, shape index: {}]  }
   0x1   :  { %1862 = sst [smem:[#allocation13_spill]] %s1847_s1 }
   0x2   :  { %1863 = sst [smem:[#allocation14_spill]] %s1851_s5 }
   0x3   :  { %14 = vsyncpa [#allocation3], 0 }
   0x4   :  { %16 = vsyncpa [#allocation3 + $0x1], 0 }
   0x5   :  { %17 = vsyncpa [#allocation6], 0 }
   0x6   :  { %18 = vsyncpa [#allocation4], 0 }
   0x7   :  { %20 = vsyncpa [#allocation4 + $0x1], 0  ;;  %s1526_s30 = smov 0   ;;  %s1528_s10 = smov 0  }
   0x8   :  { %s1530_s11 = smov 0   ;;  %s1532_s12 = smov 0  }
   0x9 LB: > { %s1547_s13 = sadd.s32 4294967295, %s1463_s12   ;;  %s1086_s14 = sadd.s32 4294967294, %s1463_s12   ;;  %s1463_s12 = sphi %s1532_s12, %s1886_s12   ;;  %s1459_s11 = sphi %s1530_s11, %s1885_s11   ;;  %s1455_s10 = sphi %s1528_s10, %s1884_s10   ;;  %s1451_s30 = sphi %s1526_s30, %s1883_s30  }
   0xa   : > { %p46_p0 = scmp.ne.s32.totalorder %s1455_s10, %s1451_s30  ;;  %p1858_p1 = scmp.eq.s32.totalorder %s1547_s13, 0 }
   0xb   : > { %p238_p2 = scmp.eq.s32.totalorder %s1547_s13, 1  ;;  %p244_p3 = scmp.eq.s32.totalorder %s1086_s14, 1 }
   0xc   : > { %p1556_p4 = por %p1858_p1, %p46_p0  ;;  %p1087_p5 = scmp.ge.s32.totalorder %s1463_s12, 1 }
   0xd   : > { %p1561_p6 = por %p244_p3, %p46_p0  ;;  %p251_p7 = scmp.lt.s32.totalorder %s1463_s12, 3 }
   0xe   : > { %s1864_s15 = scalar_select %p1556_p4, 1, 0 }
   0xf   : > { %s1865_s16 = scalar_select %p1561_p6, 1, 0 }
  0x10   : > { %p1566_p8 = pnand %p1087_p5, %p251_p7  ;;  %s1465_s18 = smov [#allocation5]  }
  0x11   : > { %s263_s19 = sshll.u32 %s1465_s18, 4  ;;  %s1466_s21 = smov [#allocation7]   ;;  %s264_s19 = int_to_ptr.vmem [resolvable:$true] %s263_s19 }
  0x12   : > { %s1866_s17 = scalar_select %p1566_p8, 1, 0 }
  0x13   : > { %p1181_p9 = pneg %p1566_p8  ;;  %s285_s22 = sshll.u32 %s1466_s21, 4  ;;  %s286_s22 = int_to_ptr.vmem [resolvable:$true] %s285_s22 }
  0x14   : > { %s1326_s23 = scalar_lea.vmem %s264_s19, 2048  ;;  %p1334_p5 = scmp.lt.s32.totalorder %s264_s19, %s264_s19 }
  0x15   : > { %p1575_p11 = pnand %p1181_p9, %p1858_p1  ;;  %p1327_p13 = scmp.ne.s32.totalorder %s264_s19, %s1326_s23 }
  0x16   : > { %p1335_p7 = scmp.lt.s32.totalorder %s1326_s23, %s1326_s23 }
  0x17   : > { %p1317_p12 = pneg %p1575_p11 }
  0x18   : > { %p1336_p10 = por %p1335_p7, %p1334_p5 }
  0x19   : > { %p1329_p0 = pnand %p1327_p13, %p1317_p12 }
  0x1b   : > { %p1330_p3 = pneg %p1329_p0 }
  0x1d   : > { %p1337_p9 = pnand %p1336_p10, %p1330_p3 }
  0x1f   : > { %1340 = shalt.err (!%p1337_p9)
}
  0x20   : > { %s1856_s24 = smov 128   ;;  %s1857_s25 = smov 8  }
  0x21   : > { %s1868_s1 = sld [smem:[#allocation13_spill]]  ;;  %s1352_s28 = scalar_lea.vmem %s286_s22, 2048 }
  0x22   : > { %p1353_p13 = scmp.ne.s32.totalorder %s286_s22, %s1352_s28  ;;  %p1360_p10 = scmp.lt.s32.totalorder %s286_s22, %s286_s22 }
  0x23   : > { %p1361_p3 = scmp.lt.s32.totalorder %s1352_s28, %s1352_s28 }
  0x24   : > { %p1355_p0 = pnand %p1353_p13, %p1317_p12 }
  0x25   : > { %p1362_p7 = por %p1361_p3, %p1360_p10 }
  0x26   : > { %p1356_p5 = pneg %p1355_p0 }
  0x27   : > { %1184 = dma.hbm_to_vmem [thread:$0]  (!%p1575_p11), %s1868_s1, 2048, %s264_s19, [#allocation6], %s1856_s24, %s1856_s24, %s1857_s25  }
  0x28   : > { %p1363_p9 = pnand %p1362_p7, %p1356_p5 }
  0x2a   : > { %1366 = shalt.err (!%p1363_p9)
}
  0x2b   : > { %s1469_s29 = smov 64   ;;  %s1470_s14 = smov 4  }
  0x2c   : > { %s1869_s5 = sld [smem:[#allocation14_spill]]  ;;  %s1601_s21 = sadd.s32 1, %s1463_s12  }
  0x2d   : > { %s30_s23 = ssub.s32 %s1463_s12, %s1601_s21  ;;  %s33_s26 = sadd.s32 1, %s1459_s11 }
  0x2e   : > { %p31_p12 = scmp.eq.s32.totalorder %s30_s23, 0  ;;  %p40_p13 = scmp.ne.s32.totalorder %s1459_s11, %s1455_s10 }
  0x2f   : > { %p41_p0 = scmp.eq.s32.totalorder %s1463_s12, 0  ;;  %p1198_p3 = scmp.lt.s32.totalorder %s1463_s12, 2 }
  0x30   : > { %s1610_s27 = scalar_select %p31_p12, %s1459_s11, %s33_s26  }
  0x31   : > { %p42_p5 = por %p41_p0, %p40_p13  ;;  %p1614_p10 = por %p238_p2, %p40_p13 }
  0x32   : > { %1187 = dma.hbm_to_vmem [thread:$0]  (!%p1575_p11), %s1869_s5, 2048, %s286_s22, [#allocation6], %s1469_s29, %s1469_s29, %s1470_s14  }
  0x33   : > { %1870 = sst [smem:[#allocation12_spill]] %s1610_s27  ;;  %s308_s20 = sand.u32 1, %s1459_s11  }
  0x34   : > { %s1871_s28 = scalar_select %p1614_p10, 1, 0 }
  0x35   : > { %s1091_s18 = sshll.u32 %s308_s20, 5  ;;  %s1139_s22 = sshll.u32 %s1463_s12, 9 }
  0x36   : > { %s1624_s19 = scalar_lea.hbm %s1846_s0, %s1139_s22  ;;  %s312_s23 = scalar_lea.vmem [#allocation2], %s1091_s18 }
  0x37   : > { %s319_s26 = sshll.u32 %s312_s23, 4  ;;  %p1628_p2 = pnand %p1198_p3, %p42_p5  ;;  %s1626_s26 = int_to_ptr.vmem [resolvable:$true] %s319_s26 }
  0x38   : > { %s1632_s25 = scalar_lea.sflag [#allocation3], %s308_s20  ;;  %s1367_s1 = scalar_lea.hbm %s1624_s19, 512 }
  0x39   : > { %p1368_p11 = scmp.ne.s32.totalorder %s1624_s19, %s1367_s1  ;;  %p1369_p7 = pneg %p1628_p2 }
  0x3a   : > { %s1372_s18 = scalar_lea.hbm %s1846_s0, 1024  ;;  %p1373_p13 = scmp.lt.s32.totalorder %s1624_s19, %s1846_s0 }
  0x3b   : > { %p1370_p9 = pnand %p1369_p7, %p1368_p11  ;;  %p1374_p0 = scmp.lt.s32.totalorder %s1372_s18, %s1367_s1 }
  0x3d   : > { %p1371_p12 = pneg %p1370_p9  ;;  %p1375_p5 = por %p1374_p0, %p1373_p13 }
  0x3f   : > { %p1376_p3 = pnand %p1375_p5, %p1371_p12 }
  0x41   : > { %1379 = shalt.err (!%p1376_p3)
}
  0x42   : > { %s1380_s20 = scalar_lea.vmem %s1626_s26, 512  ;;  %s1471_s5 = smov [#allocation2]  }
  0x43   : > { %p1381_p1 = scmp.ne.s32.totalorder %s1626_s26, %s1380_s20  ;;  %s1385_s27 = sshll.u32 %s1471_s5, 4  ;;  %s1386_s27 = int_to_ptr.vmem [resolvable:$false] %s1385_s27 }
  0x44   : > { %s1387_s22 = scalar_lea.vmem %s1386_s27, 1024  ;;  %p1388_p9 = scmp.lt.s32.totalorder %s1626_s26, %s1386_s27 }
  0x45   : > { %p1383_p6 = pnand %p1381_p1, %p1369_p7  ;;  %p1389_p10 = scmp.lt.s32.totalorder %s1387_s22, %s1380_s20 }
  0x47   : > { %p1384_p11 = pneg %p1383_p6  ;;  %p1390_p4 = por %p1389_p10, %p1388_p9 }
  0x49   : > { %p1391_p8 = pnand %p1390_p4, %p1384_p11 }
  0x4b   : > { %1394 = shalt.err (!%p1391_p8)
}
  0x4c   : > { %s1873_s1 = smov 8   ;;  %s1874_s29 = smov 128  }
  0x4d   : > { %1191 = dma.hbm_to_vmem [thread:$0]  (!%p1628_p2), %s1624_s19, 512, %s1626_s26, %s1632_s25, %s1874_s29, %s1874_s29, %s1873_s1  }
  0x4e   : > { %p1875_p1 = scmp.ne.s32.totalorder %s1866_s17, 0 }
  0x4f   : > { %s1659_s5 = sand.u32 (!%p1875_p1), 1, %s1455_s10   ;;  %p1876_p4 = scmp.ne.s32.totalorder (!%p1875_p1), %s1864_s15, 0 }
  0x50   : > { %331 = sbr.rel (%p1875_p1) target bundleno = 915 (0x393), region = 56  ;;  %s1095_s27 = sshll.u32 (!%p1875_p1), %s1659_s5, 5 }
  0x51   : > { %s334_s18 = scalar_lea.sflag (!%p1875_p1), [#allocation3], %s1659_s5  ;;  %s1665_s24 = scalar_lea.vmem (!%p1875_p1), [#allocation2], %s1095_s27 }
  0x55   : > { %1438 = dma.done.wait (%p1876_p4), %s334_s18, 512  }
  0x56   : > { %1440 = vsyncadd (%p1876_p4), %s334_s18, 4294966784  ;;  %p1877_p6 = scmp.eq.s32.totalorder %s1547_s13, 0 }
  0x58   : > { %1442 = dma.done.wait (%p1877_p6), [#allocation6], 4096   ;;  %p1878_p8 = pmov %p1877_p6 }
  0x59   : > { %v1472_v0 = vmov 0   ;;  %v1243_v1 = vld [vmem:[#allocation5 + $0x74] ss:$8 sps:$4 sm:$0xff]   ;;  %v1245_v2 = vld [vmem:[#allocation5 + $0x70] ss:$8 sps:$4 sm:$0xff]   ;;  %v1676_v17 = vld [vmem:[%s1665_s24] sm:$0xff]  ;;  %v407_v23 = vlaneseq }
  0x5a   : > { %1444 = vsyncadd (%p1878_p8), [#allocation6], 4294963200  ;;  %529 = vmatprep.mubr.bf16.mxu0 %v1472_v0  ;;  %497 = vmatprep.subr.bf16.mxu0 %v1243_v1  ;;  %v1246_v3 = vld [vmem:[#allocation5 + $0x64] ss:$8 sps:$4 sm:$0xff]   ;;  %v1248_v4 = vld [vmem:[#allocation5 + $0x60] ss:$8 sps:$4 sm:$0xff]  }
  0x5b   : > { %498 = vmatpush1.bf16.msra.mxu0 %v1245_v2  ;;  %v1249_v5 = vld [vmem:[#allocation5 + $0x54] ss:$8 sps:$4 sm:$0xff]   ;;  %v1251_v6 = vld [vmem:[#allocation5 + $0x50] ss:$8 sps:$4 sm:$0xff]   ;;  %v1252_v7 = vld [vmem:[#allocation5 + $0x44] ss:$8 sps:$4 sm:$0xff]  }
  0x5c   : > { %499 = vmatprep.subr.bf16.mxu0 %v1246_v3  ;;  %v1254_v8 = vld [vmem:[#allocation5 + $0x40] ss:$8 sps:$4 sm:$0xff]   ;;  %v1255_v9 = vld [vmem:[#allocation5 + $0x34] ss:$8 sps:$4 sm:$0xff]   ;;  %v1257_v10 = vld [vmem:[#allocation5 + $0x30] ss:$8 sps:$4 sm:$0xff]  }
  0x5d   : > { %v1258_v11 = vld [vmem:[#allocation5 + $0x24] ss:$8 sps:$4 sm:$0xff]   ;;  %v1260_v12 = vld [vmem:[#allocation5 + $0x20] ss:$8 sps:$4 sm:$0xff]   ;;  %v1261_v13 = vld [vmem:[#allocation5 + $0x14] ss:$8 sps:$4 sm:$0xff]  }
  0x5e   : > { %v1263_v14 = vld [vmem:[#allocation5 + $0x10] ss:$8 sps:$4 sm:$0xff]   ;;  %v1264_v15 = vld [vmem:[#allocation5 + $0x4] ss:$8 sps:$4 sm:$0xff]   ;;  %v1266_v16 = vld [vmem:[#allocation5] ss:$8 sps:$4 sm:$0xff]  }
  0x5f   : > { %500 = vmatpush1.bf16.msra.mxu0 %v1248_v4  ;;  %v1679_v18 = vld [vmem:[%s1665_s24 + $0x8] sm:$0xff]  ;;  %v1684_v20 = vld [vmem:[%s1665_s24 + $0x10] sm:$0xff]  ;;  %v1687_v21 = vld [vmem:[%s1665_s24 + $0x18] sm:$0xff]  ;;  %v408_v24 = vshrl.u32 %v407_v23, 7  ;;  %s379_s24 = scalar_lea.vmem [#allocation8], %s1095_s27  ;;  %s1140_s15 = sshll.u32 %s1547_s13, 9 }
  0x60   : > { %501 = vmatprep.subr.bf16.mxu0 %v1249_v5  ;;  %v387_v19 = vpack.c.bf16 %v1679_v18, %v1676_v17  ;;  %v388_v22 = vpack.c.bf16 %v1687_v21, %v1684_v20  ;;  %v405_v26 = vld [vmem:[%s1848_s2] sm:$0x3]  ;;  %v1267_v62 = vld [vmem:[#allocation7 + $0x78] sm:$0xff]   ;;  %v1270_v1 = vld [vmem:[#allocation7 + $0x30] sm:$0xff]   ;;  %s994_s17 = sshll.u32 %s379_s24, 4  ;;  %s1800_s19 = scalar_lea.hbm %s1855_s9, %s1140_s15  ;;  %s1802_s17 = int_to_ptr.vmem [resolvable:$true] %s994_s17 }
  0x61   : > { %v1691_v25 = vsub.s32 0, %v408_v24  ;;  %v1696_v27 = vsub.s32 1, %v408_v24  ;;  %v1268_v63 = vld [vmem:[#allocation7 + $0x38] sm:$0xff]   ;;  %1141 = vmatprep.subr.bf16.mxu1 %v1267_v62  ;;  %v1271_v2 = vld [vmem:[#allocation7 + $0x68] sm:$0xff]   ;;  %v1273_v4 = vld [vmem:[#allocation7 + $0x60] sm:$0xff]   ;;  %s981_s26 = scalar_lea.sflag [#allocation4], %s1659_s5 }
  0x62   : > { %1142 = vmatpush3.bf16.msra.mxu1 %v1268_v63  ;;  %v1272_v3 = vld [vmem:[#allocation7 + $0x28] sm:$0xff]   ;;  %v1274_v5 = vld [vmem:[#allocation7 + $0x20] sm:$0xff]   ;;  %s1395_s14 = scalar_lea.vmem %s1802_s17, 512  ;;  %p1879_p2 = scmp.ne.s32.totalorder %s1871_s28, 0 }
  0x63   : > { %502 = vmatpush1.bf16.msra.mxu0 %v1251_v6  ;;  %v410_v28 = vrot.slane %v405_v26, %v1691_v25  ;;  %v414_v29 = vrot.slane %v405_v26, %v1696_v27  ;;  %v1275_v6 = vld [vmem:[#allocation7 + $0x58] sm:$0xff]   ;;  %p1396_p10 = scmp.ne.s32.totalorder %s1802_s17, %s1395_s14  ;;  %s1473_s13 = smov [#allocation8]  }
  0x64   : > { %503 = vmatprep.subr.bf16.mxu0 %v1252_v7  ;;  %v1276_v7 = vld [vmem:[#allocation7 + $0x18] sm:$0xff]   ;;  %s1399_s23 = sshll.u32 %s1473_s13, 4  ;;  %s1400_s23 = int_to_ptr.vmem [resolvable:$false] %s1399_s23 }
  0x65   : > { %p1397_p7 = pnand %p1396_p10, %p1879_p2  ;;  %s1401_s20 = scalar_lea.vmem %s1400_s23, 1024 }
  0x66   : > { %p1402_p13 = scmp.lt.s32.totalorder %s1802_s17, %s1400_s23  ;;  %p1403_p0 = scmp.lt.s32.totalorder %s1401_s20, %s1395_s14 }
  0x67   : > { %504 = vmatpush1.bf16.msra.mxu0 %v1254_v8  ;;  %v1277_v8 = vld [vmem:[#allocation7 + $0x50] sm:$0xff]   ;;  %p1398_p12 = pneg %p1397_p7 }
  0x68   : > { %505 = vmatprep.subr.bf16.mxu0 %v1255_v9  ;;  %v1278_v9 = vld [vmem:[#allocation7 + $0x10] sm:$0xff]   ;;  %p1404_p5 = por %p1403_p0, %p1402_p13 }
  0x6a   : > { %p1405_p3 = pnand %p1404_p5, %p1398_p12 }
  0x6b   : > { %506 = vmatpush1.bf16.msra.mxu0 %v1257_v10  ;;  %v1279_v10 = vld [vmem:[#allocation7 + $0x48] sm:$0xff]  }
  0x6c   : > { %507 = vmatprep.subr.bf16.mxu0 %v1258_v11  ;;  %v1280_v11 = vld [vmem:[#allocation7 + $0x8] sm:$0xff]  }
  0x6f   : > { %508 = vmatpush1.bf16.msra.mxu0 %v1260_v12  ;;  %v1281_v12 = vld [vmem:[#allocation7 + $0x40] sm:$0xff]  }
  0x70   : > { %509 = vmatprep.subr.bf16.mxu0 %v1261_v13  ;;  %v1282_v13 = vld [vmem:[#allocation7] sm:$0xff]  }
  0x73   : > { %510 = vmatpush1.bf16.msra.mxu0 %v1263_v14 }
  0x74   : > { %511 = vmatprep.subr.bf16.mxu0 %v1264_v15 }
  0x77   : > { %512 = vmatpush1.bf16.msra.mxu0 %v1266_v16 }
  0x7a   : > { %530 = vmatmul.mubr.bf16.vlgmr.msra.gmra.mxu0 %v387_v19 }
  0x7b   : > { %539 = vmatprep.mubr.bf16.mxu0 %v1472_v0  ;;  %v1269_v0 = vld [vmem:[#allocation7 + $0x70] sm:$0xff]  }
  0x7c   : > { %1143 = vmatprep.subr.bf16.mxu1 %v1269_v0 }
  0x7d   : > { %1144 = vmatpush3.bf16.msra.mxu1 %v1270_v1 }
  0x7e   : > { %1145 = vmatprep.subr.bf16.mxu1 %v1271_v2 }
  0x81   : > { %1146 = vmatpush3.bf16.msra.mxu1 %v1272_v3 }
  0x82   : > { %540 = vmatmul.mubr.bf16.gmra.mxu0 %v388_v22  ;;  %1147 = vmatprep.subr.bf16.mxu1 %v1273_v4 }
  0x85   : > { %1148 = vmatpush3.bf16.msra.mxu1 %v1274_v5 }
  0x86   : > { %1149 = vmatprep.subr.bf16.mxu1 %v1275_v6 }
  0x89   : > { %1150 = vmatpush3.bf16.msra.mxu1 %v1276_v7 }
  0x8a   : > { %1151 = vmatprep.subr.bf16.mxu1 %v1277_v8 }
  0x8d   : > { %1152 = vmatpush3.bf16.msra.mxu1 %v1278_v9 }
  0x8e   : > { %1153 = vmatprep.subr.bf16.mxu1 %v1279_v10 }
  0x91   : > { %1154 = vmatpush3.bf16.msra.mxu1 %v1280_v11 }
  0x92   : > { %1155 = vmatprep.subr.bf16.mxu1 %v1281_v12 }
  0x95   : > { %1156 = vmatpush3.bf16.msra.mxu1 %v1282_v13 }
 0x13a   : > { %v531_v30 = vpop.f32.mrf.mxu0 }
 0x13b   : > { %v1700_v31 = vadd.f32 %v531_v30, %v410_v28 }
 0x13c   : > { %v533_v32 = vpop.f32.mrf.mxu0 }
 0x13d   : > { %v1702_v33 = vadd.f32 %v533_v32, %v414_v29  ;;  %v564_v37 = vmul.f32 %v1700_v31, %v1700_v31 }
 0x13e   : > { %v535_v34 = vpop.f32.mrf.mxu0 }
 0x13f   : > { %v1704_v35 = vadd.f32 %v535_v34, %v410_v28  ;;  %v552_v36 = vadd.f32 %v1702_v33, %v1700_v31  ;;  %v565_v38 = vmul.f32 %v1702_v33, %v1702_v33 }
 0x140   : > { %v537_v39 = vpop.f32.mrf.mxu0 }
 0x141   : > { %v1712_v40 = vadd.f32 %v537_v39, %v414_v29  ;;  %553 = vadd.xlane.f32.xlu0 %v552_v36  ;;  %v572_v41 = vadd.f32 %v565_v38, %v564_v37  ;;  %v566_v44 = vmul.f32 %v1704_v35, %v1704_v35 }
 0x142   : > { %v541_v42 = vpop.f32.mrf.mxu0 }
 0x143   : > { %573 = vadd.xlane.f32.xlu1 %v572_v41  ;;  %v555_v43 = vadd.f32 %v1712_v40, %v1704_v35  ;;  %v567_v45 = vmul.f32 %v1712_v40, %v1712_v40  ;;  %v1720_v47 = vadd.f32 %v541_v42, %v410_v28 }
 0x144   : > { %v543_v46 = vpop.f32.mrf.mxu0 }
 0x145   : > { %v1722_v48 = vadd.f32 %v543_v46, %v414_v29  ;;  %556 = vadd.xlane.f32.xlu0 %v555_v43  ;;  %v575_v49 = vadd.f32 %v567_v45, %v566_v44  ;;  %v568_v56 = vmul.f32 %v1720_v47, %v1720_v47 }
 0x146   : > { %v545_v50 = vpop.f32.mrf.mxu0 }
 0x147   : > { %576 = vadd.xlane.f32.xlu1 %v575_v49  ;;  %v558_v51 = vadd.f32 %v1722_v48, %v1720_v47  ;;  %v569_v52 = vmul.f32 %v1722_v48, %v1722_v48  ;;  %v1728_v54 = vadd.f32 %v545_v50, %v410_v28 }
 0x148   : > { %v547_v53 = vpop.f32.mrf.mxu0 }
 0x149   : > { %v1730_v55 = vadd.f32 %v547_v53, %v414_v29  ;;  %559 = vadd.xlane.f32.xlu0 %v558_v51  ;;  %v578_v58 = vadd.f32 %v569_v52, %v568_v56  ;;  %v570_v60 = vmul.f32 %v1728_v54, %v1728_v54 }
 0x14b   : > { %v561_v57 = vadd.f32 %v1730_v55, %v1728_v54  ;;  %v571_v59 = vmul.f32 %v1730_v55, %v1730_v55 }
 0x14d   : > { %562 = vadd.xlane.f32.xlu1 %v561_v57  ;;  %579 = vadd.xlane.f32.xlu0 %v578_v58  ;;  %v581_v61 = vadd.f32 %v571_v59, %v570_v60  ;;  %v550_v58 = vld [vmem:[%s1849_s3] sm:$0x3] }
 0x14e   : > { %v551_v60 = vld [vmem:[%s1850_s4] sm:$0x3]  ;;  %v636_v1 = vrot.slane %v550_v58, %v1696_v27 }
 0x14f   : > { %v651_v3 = vrot.slane %v551_v60, %v1691_v25  ;;  %v655_v5 = vrot.slane %v551_v60, %v1696_v27 }
 0x151   : > { %582 = vadd.xlane.f32.xlu1 %v581_v61  ;;  %v632_v61 = vrot.slane %v550_v58, %v1691_v25 }
 0x1ca   : > { %v554_v14 = vpop.xlane.xlu0 %553 }
 0x1cb   : > { %v584_v15 = vmul.f32 0.00390625, %v554_v14 }
 0x1cc   : > { %v574_v16 = vpop.xlane.xlu1 %573 }
 0x1cd   : > { %v588_v19 = vmul.f32 0.00390625, %v574_v16  ;;  %v592_v22 = vmul.f32 %v584_v15, %v584_v15  ;;  %v612_v62 = vsub.f32 %v1700_v31, %v584_v15  ;;  %v613_v63 = vsub.f32 %v1702_v33, %v584_v15 }
 0x1ce   : > { %v557_v23 = vpop.xlane.xlu0 %556 }
 0x1cf   : > { %v596_v24 = vsub.f32 %v588_v19, %v592_v22  ;;  %v585_v26 = vmul.f32 0.00390625, %v557_v23 }
 0x1d0   : > { %v577_v28 = vpop.xlane.xlu1 %576 }
 0x1d1   : > { %v600_v29 = vmax.f32 %v596_v24, 0.0  ;;  %v589_v30 = vmul.f32 0.00390625, %v577_v28  ;;  %v593_v32 = vmul.f32 %v585_v26, %v585_v26  ;;  %v614_v9 = vsub.f32 %v1704_v35, %v585_v26 }
 0x1d2   : > { %v560_v34 = vpop.xlane.xlu0 %559  ;;  %v615_v10 = vsub.f32 %v1712_v40, %v585_v26 }
 0x1d3   : > { %v604_v36 = vadd.f32 1e-05, %v600_v29  ;;  %v586_v37 = vmul.f32 0.00390625, %v560_v34  ;;  %v597_v38 = vsub.f32 %v589_v30, %v593_v32 }
 0x1d5   : > { %1283 = vrsqrt.f32 %v604_v36  ;;  %v601_v39 = vmax.f32 %v597_v38, 0.0  ;;  %v594_v44 = vmul.f32 %v586_v37, %v586_v37  ;;  %v616_v19 = vsub.f32 %v1720_v47, %v586_v37 }
 0x1d6   : > { %v563_v41 = vpop.xlane.xlu1 %562  ;;  %v580_v42 = vpop.xlane.xlu0 %579  ;;  %v617_v27 = vsub.f32 %v1722_v48, %v586_v37 }
 0x1d7   : > { %v587_v43 = vmul.f32 0.00390625, %v563_v41  ;;  %v590_v45 = vmul.f32 0.00390625, %v580_v42  ;;  %v605_v46 = vadd.f32 1e-05, %v601_v39 }
 0x1d9   : > { %v598_v49 = vsub.f32 %v590_v45, %v594_v44  ;;  %1285 = vrsqrt.f32 %v605_v46  ;;  %v595_v52 = vmul.f32 %v587_v43, %v587_v43  ;;  %v618_v29 = vsub.f32 %v1728_v54, %v587_v43 }
 0x1da   : > { %v583_v50 = vpop.xlane.xlu1 %582  ;;  %v619_v30 = vsub.f32 %v1730_v55, %v587_v43 }
 0x1db   : > { %v602_v51 = vmax.f32 %v598_v49, 0.0  ;;  %v591_v53 = vmul.f32 0.00390625, %v583_v50 }
 0x1dd   : > { %v606_v56 = vadd.f32 1e-05, %v602_v51  ;;  %v599_v57 = vsub.f32 %v591_v53, %v595_v52 }
 0x1df   : > { %1287 = vrsqrt.f32 %v606_v56  ;;  %v603_v59 = vmax.f32 %v599_v57, 0.0 }
 0x1e1   : > { %v607_v0 = vadd.f32 1e-05, %v603_v59 }
 0x1e2   : > { %v1284_v2 = vpop.eup %1283 }
 0x1e3   : > { %1289 = vrsqrt.f32 %v607_v0  ;;  %v621_v4 = vmul.f32 %v1284_v2, %v613_v63  ;;  %v620_v6 = vmul.f32 %v1284_v2, %v612_v62 }
 0x1e5   : > { %v640_v7 = vmul.f32 %v636_v1, %v621_v4  ;;  %v639_v8 = vmul.f32 %v632_v61, %v620_v6 }
 0x1e6   : > { %v1286_v31 = vpop.eup %1285 }
 0x1e7   : > { %v659_v11 = vadd.f32 %v655_v5, %v640_v7  ;;  %v658_v33 = vadd.f32 %v651_v3, %v639_v8  ;;  %v623_v12 = vmul.f32 %v1286_v31, %v615_v10  ;;  %v622_v13 = vmul.f32 %v1286_v31, %v614_v9 }
 0x1e9   : > { %v675_v14 = vmul.f32 0.70710677, %v659_v11  ;;  %v674_v15 = vmul.f32 0.70710677, %v658_v33  ;;  %v642_v16 = vmul.f32 %v636_v1, %v623_v12  ;;  %v641_v25 = vmul.f32 %v632_v61, %v622_v13 }
 0x1ea   : > { %v667_v56 = vmul.f32 0.5, %v659_v11  ;;  %v666_v59 = vmul.f32 0.5, %v658_v33 }
 0x1eb   : > { %v661_v23 = vadd.f32 %v655_v5, %v642_v16  ;;  %1291 = verf.f32 %v675_v14  ;;  %v660_v24 = vadd.f32 %v651_v3, %v641_v25 }
 0x1ec   : > { %v1288_v22 = vpop.eup %1287  ;;  %1293 = verf.f32 %v674_v15 }
 0x1ed   : > { %v625_v35 = vmul.f32 %v1288_v22, %v617_v27  ;;  %v624_v40 = vmul.f32 %v1288_v22, %v616_v19  ;;  %v677_v26 = vmul.f32 0.70710677, %v661_v23  ;;  %v676_v28 = vmul.f32 0.70710677, %v660_v24 }
 0x1ee   : > { %v669_v57 = vmul.f32 0.5, %v661_v23  ;;  %v668_v60 = vmul.f32 0.5, %v660_v24  ;;  %v1115_v23 = vld [vmem:[%s1852_s6] ss:$0 sm:$0xff] }
 0x1ef   : > { %v644_v32 = vmul.f32 %v636_v1, %v625_v35  ;;  %v643_v34 = vmul.f32 %v632_v61, %v624_v40  ;;  %1295 = verf.f32 %v677_v26 }
 0x1f0   : > { %v1290_v36 = vpop.eup %1289  ;;  %1297 = verf.f32 %v676_v28 }
 0x1f1   : > { %v627_v47 = vmul.f32 %v1290_v36, %v619_v30  ;;  %v663_v48 = vadd.f32 %v655_v5, %v644_v32  ;;  %v626_v37 = vmul.f32 %v1290_v36, %v618_v29  ;;  %v662_v38 = vadd.f32 %v651_v3, %v643_v34 }
 0x1f3   : > { %v646_v39 = vmul.f32 %v636_v1, %v627_v47  ;;  %v679_v41 = vmul.f32 0.70710677, %v663_v48  ;;  %v645_v42 = vmul.f32 %v632_v61, %v626_v37  ;;  %v678_v44 = vmul.f32 0.70710677, %v662_v38 }
 0x1f4   : > { %v671_v10 = vmul.f32 0.5, %v663_v48  ;;  %v670_v33 = vmul.f32 0.5, %v662_v38 }
 0x1f5   : > { %v665_v45 = vadd.f32 %v655_v5, %v646_v39  ;;  %1299 = verf.f32 %v679_v41  ;;  %v664_v46 = vadd.f32 %v651_v3, %v645_v42 }
 0x1f6   : > { %1301 = verf.f32 %v678_v44 }
 0x1f7   : > { %v681_v54 = vmul.f32 0.70710677, %v665_v45  ;;  %v680_v49 = vmul.f32 0.70710677, %v664_v46  ;;  %v673_v31 = vmul.f32 0.5, %v665_v45  ;;  %v672_v12 = vmul.f32 0.5, %v664_v46 }
 0x1f8   : > { %v1292_v55 = vpop.eup %1291 }
 0x1f9   : > { %1303 = verf.f32 %v681_v54  ;;  %v1294_v43 = vpop.eup %1293  ;;  %v691_v50 = vadd.f32 1.0, %v1292_v55 }
 0x1fa   : > { %1305 = verf.f32 %v680_v49  ;;  %v690_v52 = vadd.f32 1.0, %v1294_v43 }
 0x1fb   : > { %v699_v62 = vmul.f32 %v691_v50, %v667_v56 }
 0x1fc   : > { %v1296_v51 = vpop.eup %1295  ;;  %v698_v0 = vmul.f32 %v690_v52, %v666_v59 }
 0x1fd   : > { %v1298_v53 = vpop.eup %1297  ;;  %v693_v58 = vadd.f32 1.0, %v1296_v51 }
 0x1fe   : > { %v692_v61 = vadd.f32 1.0, %v1298_v53 }
 0x1ff   : > { %v701_v63 = vmul.f32 %v693_v58, %v669_v57 }
 0x200   : > { %v700_v1 = vmul.f32 %v692_v61, %v668_v60 }
 0x201   : > { %v707_v3 = vpack.c.bf16 %v701_v63, %v699_v62 }
 0x202   : > { %v1300_v2 = vpop.eup %1299  ;;  %v706_v5 = vpack.c.bf16 %v700_v1, %v698_v0 }
 0x203   : > { %v1302_v4 = vpop.eup %1301  ;;  %877 = vmatprep.mubr.bf16.mxu1 %v707_v3  ;;  %v695_v6 = vadd.f32 1.0, %v1300_v2 }
 0x204   : > { %878 = vmatmul.mubr.bf16.vlgmr.msra.gmra.mxu1 %v706_v5  ;;  %v694_v8 = vadd.f32 1.0, %v1302_v4 }
 0x205   : > { %v703_v14 = vmul.f32 %v695_v6, %v671_v10 }
 0x206   : > { %v1304_v7 = vpop.eup %1303  ;;  %v702_v16 = vmul.f32 %v694_v8, %v670_v33 }
 0x207   : > { %v1306_v9 = vpop.eup %1305  ;;  %v697_v11 = vadd.f32 1.0, %v1304_v7 }
 0x208   : > { %v696_v13 = vadd.f32 1.0, %v1306_v9 }
 0x209   : > { %v705_v15 = vmul.f32 %v697_v11, %v673_v31 }
 0x20a   : > { %v704_v25 = vmul.f32 %v696_v13, %v672_v12 }
 0x20b   : > { %v709_v19 = vpack.c.bf16 %v705_v15, %v703_v14  ;;  %v1132_v15 = vld [vmem:[%s1853_s7] ss:$0 sm:$0xff] }
 0x20c   : > { %v708_v27 = vpack.c.bf16 %v704_v25, %v702_v16  ;;  %v1133_v25 = vld [vmem:[%s1854_s8] ss:$0 sm:$0xff] }
 0x20d   : > { %885 = vmatprep.mubr.bf16.mxu1 %v709_v19 }
 0x20e   : > { %886 = vmatmul.mubr.bf16.gmra.mxu1 %v708_v27 }
 0x2c4   : > { %v1157_v22 = vpop.f32.mrf.mxu1 }
 0x2c6   : > { %v1158_v24 = vpop.f32.mrf.mxu1 }
 0x2c7   : > { %v1159_v35 = vadd.f32 %v1158_v24, %v1157_v22 }
 0x2c8   : > { %v1160_v40 = vpop.f32.mrf.mxu1 }
 0x2c9   : > { %v1761_v26 = vadd.f32 %v1159_v35, %v1115_v23 }
 0x2ca   : > { %v1161_v28 = vpop.f32.mrf.mxu1 }
 0x2cb   : > { %v1162_v29 = vadd.f32 %v1161_v28, %v1160_v40  ;;  %896 = vadd.xlane.f32.xlu0 %v1761_v26  ;;  %v904_v34 = vmul.f32 %v1761_v26, %v1761_v26 }
 0x2cd   : > { %v1764_v30 = vadd.f32 %v1162_v29, %v1115_v23 }
 0x2ce   : > { %v1163_v32 = vpop.f32.mrf.mxu1 }
 0x2cf   : > { %898 = vadd.xlane.f32.xlu1 %v1764_v30  ;;  %908 = vadd.xlane.f32.xlu0 %v904_v34  ;;  %v905_v37 = vmul.f32 %v1764_v30, %v1764_v30 }
 0x2d0   : > { %v1164_v36 = vpop.f32.mrf.mxu1 }
 0x2d1   : > { %v1165_v47 = vadd.f32 %v1164_v36, %v1163_v32 }
 0x2d2   : > { %v1166_v48 = vpop.f32.mrf.mxu1 }
 0x2d3   : > { %v1771_v38 = vadd.f32 %v1165_v47, %v1115_v23  ;;  %910 = vadd.xlane.f32.xlu1 %v905_v37 }
 0x2d4   : > { %v1167_v39 = vpop.f32.mrf.mxu1 }
 0x2d5   : > { %v1168_v41 = vadd.f32 %v1167_v39, %v1166_v48  ;;  %900 = vadd.xlane.f32.xlu0 %v1771_v38  ;;  %v906_v44 = vmul.f32 %v1771_v38, %v1771_v38 }
 0x2d7   : > { %v1774_v42 = vadd.f32 %v1168_v41, %v1115_v23 }
 0x2d9   : > { %902 = vadd.xlane.f32.xlu1 %v1774_v42  ;;  %912 = vadd.xlane.f32.xlu0 %v906_v44  ;;  %v907_v45 = vmul.f32 %v1774_v42, %v1774_v42 }
 0x2dd   : > { %914 = vadd.xlane.f32.xlu1 %v907_v45 }
 0x354   : > { %v897_v46 = vpop.xlane.xlu0 %896 }
 0x355   : > { %v916_v54 = vmul.f32 0.0078125, %v897_v46 }
 0x357   : > { %v924_v43 = vmul.f32 %v916_v54, %v916_v54  ;;  %v944_v13 = vsub.f32 %v1761_v26, %v916_v54 }
 0x358   : > { %v899_v49 = vpop.xlane.xlu1 %898  ;;  %v909_v55 = vpop.xlane.xlu0 %908 }
 0x359   : > { %v917_v50 = vmul.f32 0.0078125, %v899_v49  ;;  %v920_v51 = vmul.f32 0.0078125, %v909_v55 }
 0x35b   : > { %v928_v52 = vsub.f32 %v920_v51, %v924_v43  ;;  %v925_v56 = vmul.f32 %v917_v50, %v917_v50  ;;  %v945_v19 = vsub.f32 %v1764_v30, %v917_v50 }
 0x35c   : > { %v911_v53 = vpop.xlane.xlu1 %910 }
 0x35d   : > { %v932_v57 = vmax.f32 %v928_v52, 0.0  ;;  %v921_v58 = vmul.f32 0.0078125, %v911_v53 }
 0x35e   : > { %v901_v59 = vpop.xlane.xlu0 %900 }
 0x35f   : > { %v918_v60 = vmul.f32 0.0078125, %v901_v59  ;;  %v936_v61 = vadd.f32 1e-05, %v932_v57  ;;  %v929_v62 = vsub.f32 %v921_v58, %v925_v56 }
 0x361   : > { %1307 = vrsqrt.f32 %v936_v61  ;;  %v933_v63 = vmax.f32 %v929_v62, 0.0  ;;  %v926_v2 = vmul.f32 %v918_v60, %v918_v60  ;;  %v946_v26 = vsub.f32 %v1771_v38, %v918_v60 }
 0x362   : > { %v903_v0 = vpop.xlane.xlu1 %902  ;;  %v913_v1 = vpop.xlane.xlu0 %912 }
 0x363   : > { %v919_v3 = vmul.f32 0.0078125, %v903_v0  ;;  %v922_v4 = vmul.f32 0.0078125, %v913_v1  ;;  %v937_v5 = vadd.f32 1e-05, %v933_v63 }
 0x365   : > { %v930_v6 = vsub.f32 %v922_v4, %v926_v2  ;;  %1309 = vrsqrt.f32 %v937_v5  ;;  %v927_v8 = vmul.f32 %v919_v3, %v919_v3  ;;  %v947_v30 = vsub.f32 %v1774_v42, %v919_v3 }
 0x366   : > { %v915_v7 = vpop.xlane.xlu1 %914 }
 0x367   : > { %v934_v9 = vmax.f32 %v930_v6, 0.0  ;;  %v923_v10 = vmul.f32 0.0078125, %v915_v7 }
 0x369   : > { %v938_v31 = vadd.f32 1e-05, %v934_v9  ;;  %v931_v11 = vsub.f32 %v923_v10, %v927_v8 }
 0x36b   : > { %1311 = vrsqrt.f32 %v938_v31  ;;  %v935_v33 = vmax.f32 %v931_v11, 0.0 }
 0x36d   : > { %v939_v12 = vadd.f32 1e-05, %v935_v33 }
 0x36e   : > { %v1308_v14 = vpop.eup %1307 }
 0x36f   : > { %1313 = vrsqrt.f32 %v939_v12  ;;  %v948_v16 = vmul.f32 %v1308_v14, %v944_v13 }
 0x371   : > { %v958_v27 = vmul.f32 %v1132_v15, %v948_v16 }
 0x372   : > { %v1310_v22 = vpop.eup %1309 }
 0x373   : > { %v968_v23 = vadd.f32 %v1133_v25, %v958_v27  ;;  %v949_v24 = vmul.f32 %v1310_v22, %v945_v19 }
 0x375   : > { %v972_v35 = vadd.f32 %v968_v23, %v1676_v17  ;;  %v959_v40 = vmul.f32 %v1132_v15, %v949_v24 }
 0x377   : > { %v969_v29 = vadd.f32 %v1133_v25, %v959_v40  ;;  %976 = vst [vmem:[%s379_s24] sm:$0xff] %v972_v35 }
 0x378   : > { %v1312_v28 = vpop.eup %1311 }
 0x379   : > { %v950_v32 = vmul.f32 %v1312_v28, %v946_v26  ;;  %v973_v34 = vadd.f32 %v969_v29, %v1679_v18 }
 0x37b   : > { %v960_v36 = vmul.f32 %v1132_v15, %v950_v32  ;;  %977 = vst [vmem:[%s379_s24 + $0x8] sm:$0xff] %v973_v34 }
 0x37c   : > { %v1314_v47 = vpop.eup %1313 }
 0x37d   : > { %v970_v17 = vadd.f32 %v1133_v25, %v960_v36  ;;  %v951_v48 = vmul.f32 %v1314_v47, %v947_v30 }
 0x37f   : > { %v974_v37 = vadd.f32 %v970_v17, %v1684_v20  ;;  %v961_v38 = vmul.f32 %v1132_v15, %v951_v48 }
 0x381   : > { %v971_v39 = vadd.f32 %v1133_v25, %v961_v38  ;;  %978 = vst [vmem:[%s379_s24 + $0x10] sm:$0xff] %v974_v37 }
 0x383   : > { %v975_v18 = vadd.f32 %v971_v39, %v1687_v21 }
 0x385   : > { %979 = vst [vmem:[%s379_s24 + $0x18] sm:$0xff] %v975_v18 }
 0x386   : > { %1408 = shalt.err (!%p1405_p3)
}
 0x387   : > { %s1409_s22 = scalar_lea.hbm %s1800_s19, 512  ;;  %s1413_s18 = scalar_lea.hbm %s1855_s9, 1024 }
 0x388   : > { %p1410_p11 = scmp.ne.s32.totalorder %s1800_s19, %s1409_s22  ;;  %p1414_p4 = scmp.lt.s32.totalorder %s1800_s19, %s1855_s9 }
 0x389   : > { %p1415_p6 = scmp.lt.s32.totalorder %s1413_s18, %s1409_s22 }
 0x38a   : > { %p1411_p9 = pnand %p1410_p11, %p1879_p2 }
 0x38b   : > { %p1416_p8 = por %p1415_p6, %p1414_p4 }
 0x38c   : > { %p1412_p1 = pneg %p1411_p9 }
 0x38e   : > { %p1417_p10 = pnand %p1416_p8, %p1412_p1 }
 0x390   : > { %1420 = shalt.err (!%p1417_p10)
}
 0x391   : > { %s1474_s27 = smov 128   ;;  %s1475_s25 = smov 8  }
 0x392   : > { %1179 = dma.vmem_to_hbm [thread:$0]  (%p1879_p2), %s1802_s17, 512, %s1800_s19, %s981_s26, %s1474_s27, %s1474_s27, %s1475_s25  }
 0x393 PF: > { %s1009_s14 = sand.u32 1, %s1451_s30   ;;  %p1880_p7 = scmp.ne.s32.totalorder %s1865_s16, 0 }
 0x394   : > { %p1881_p12 = scmp.ge.s32.totalorder %s1463_s12, 2  ;;  %s1010_s13 = scalar_lea.sflag [#allocation4], %s1009_s14 }
 0x396   : > { %p1193_p13 = pnand %p1881_p12, %p1880_p7 }
 0x398   : > { %p1194_p0 = pneg %p1193_p13 }
 0x39a   : > { %1446 = dma.done.wait (%p1194_p0), %s1010_s13, 512  }
 0x39b   : > { %1448 = vsyncadd (%p1194_p0), %s1010_s13, 4294966784  ;;  %s1882_s23 = sld [smem:[#allocation12_spill]]  ;;  %p23_p5 = scmp.ge.s32.totalorder %s1601_s21, 4  }
 0x39c   : > { %s1883_s30 = smov %s1455_s10  ;;  %s1884_s10 = smov %s1459_s11 }
 0x39d   : > { %s1886_s12 = smov %s1601_s21  ;;  %25 = sbr.rel (!%p23_p5) target bundleno = 9 (0x9), region = 109 }
 0x3a1   : > { %s1885_s11 = smov %s1882_s23 }
 0x3a2   :  { %1015 = vsyncpa [#allocation3], 1 }
 0x3a3   :  { %1017 = vsyncpa [#allocation3 + $0x1], 1 }
 0x3a4   :  { %1018 = vsyncpa [#allocation6], 1 }
 0x3a5   :  { %1019 = vsyncpa [#allocation4], 1 }
 0x3a6   :  { %1021 = vsyncpa [#allocation4 + $0x1], 1 }

</bundles_post_ra>
